<compile_context>
chip_gen: v6e
topology: v6e:2x2x1
jax: 0.10.0
libtpu: 0.0.40
codegen_flags: <defaults>
</compile_context>

<pallas_src>
import jax
import jax.numpy as jnp
from jax.experimental import pallas as pl
from jax.experimental.pallas import tpu as pltpu


def policy_kernel(x_ref,
                  w1_ref, b1_ref,
                  w2_ref, b2_ref,
                  w3_ref, b3_ref,
                  w4_ref, b4_ref,
                  o_ref):
    # fc1 + ReLU   (bf16 MXU operands, f32 accumulation; bias/ReLU in f32,
    # live intermediate immediately re-narrowed to bf16)
    h = jnp.dot(x_ref[...], w1_ref[...], preferred_element_type=jnp.float32)
    h = jnp.maximum(h + b1_ref[...], 0.0).astype(jnp.bfloat16)
    # fc2 + ReLU
    h = jnp.dot(h, w2_ref[...], preferred_element_type=jnp.float32)
    h = jnp.maximum(h + b2_ref[...], 0.0).astype(jnp.bfloat16)
    # fc3 + ReLU
    h = jnp.dot(h, w3_ref[...], preferred_element_type=jnp.float32)
    h = jnp.maximum(h + b3_ref[...], 0.0).astype(jnp.bfloat16)
    # fc4 (logits, padded to a lane-dense 128-wide tile; padded cols carry -1e9 bias)
    logits = jnp.dot(h, w4_ref[...], preferred_element_type=jnp.float32)
    logits = logits + b4_ref[...]
    # numerically-stable softmax in f32 (padded cols -> exp(very negative) == 0)
    m = jnp.max(logits, axis=-1, keepdims=True)
    e = jnp.exp(logits - m)
    denom = jnp.sum(e, axis=-1, keepdims=True)
    o_ref[...] = (e * pl.reciprocal(denom, approx=True)).astype(o_ref.dtype)


def prepare_kernel_params(params):
    """One-time preprocessing of the f32 [in,out] weights / [1,out] biases into
    kernel-ready form (bf16 weights, lane-dense padded last layer). Keeps this
    work out of the per-call forward path."""
    action_space = params["w4"].shape[1]
    act_pad = max(128, pl.cdiv(action_space, 128) * 128)   # lane-dense output width

    w4 = jnp.zeros((params["w4"].shape[0], act_pad), jnp.float32)
    w4 = w4.at[:, :action_space].set(params["w4"]).astype(jnp.bfloat16)
    # padded logits get a very negative bias so softmax drives them to exactly 0
    # (keep b4 and the softmax math in f32).
    b4 = jnp.full((1, act_pad), -1e9, dtype=jnp.float32)
    b4 = b4.at[:, :action_space].set(params["b4"])

    return {
        "w1": params["w1"].astype(jnp.bfloat16), "b1": params["b1"],
        "w2": params["w2"].astype(jnp.bfloat16), "b2": params["b2"],
        "w3": params["w3"].astype(jnp.bfloat16), "b3": params["b3"],
        "w4": w4, "b4": b4,
        "action_space": action_space, "act_pad": act_pad,
    }


def policy_network_forward(x, kparams, *, tb=1024, out_dtype=jnp.bfloat16,
                           return_padded=False):
    """x: [B, obs] float32. kparams: output of prepare_kernel_params()."""
    B, obs = x.shape
    action_space = kparams["action_space"]
    act_pad = kparams["act_pad"]

    # --- batch tile selection ---------------------------------------------
    # cap at 2048 so double-buffered tiles stay well inside v5e's 16 MiB
    # default scoped VMEM (v6e/v7x have more headroom, this costs them nothing)
    tb = min(int(tb), 2048)
    b_min = pl.cdiv(B, 8) * 8            # sublane-aligned minimum
    tb_eff = min(tb, b_min)              # never tile bigger than the batch
    # v7x megacore: make sure the grid has >= 2 steps for mid/large batches so
    # both TensorCores get work (256-aligned half-batch tile).
    if b_min >= 512 and pl.cdiv(b_min, tb_eff) < 2:
        tb_eff = max(256, ((b_min // 2) // 256) * 256)
    b_pad = pl.cdiv(B, tb_eff) * tb_eff
    grid = (b_pad // tb_eff,)

    # --- prepare streamed input (pad batch, bf16 matmul operand) ------------
    x_p = x if b_pad == B else jnp.pad(x, ((0, b_pad - B), (0, 0)))
    x_p = x_p.astype(jnp.bfloat16)

    w1, b1 = kparams["w1"], kparams["b1"]
    w2, b2 = kparams["w2"], kparams["b2"]
    w3, b3 = kparams["w3"], kparams["b3"]
    w4, b4 = kparams["w4"], kparams["b4"]

    # --- BlockSpecs: x/out tiled over batch, weights/biases VMEM-resident ---
    def resident(arr):
        return pl.BlockSpec(arr.shape, lambda i: (0, 0))

    # advisory cost hint for XLA's scheduler
    flops = 2 * b_pad * (obs * 128 + 128 * 256 + 256 * 128 + 128 * act_pad)
    transcendentals = b_pad * act_pad
    weight_bytes = sum(int(a.size) * a.dtype.itemsize
                       for a in (w1, b1, w2, b2, w3, b3, w4, b4))
    bytes_accessed = (b_pad * obs * 2            # bf16 input stream
                      + b_pad * act_pad * jnp.dtype(out_dtype).itemsize
                      + weight_bytes)

    out = pl.pallas_call(
        policy_kernel,
        out_shape=jax.ShapeDtypeStruct((b_pad, act_pad), out_dtype),
        grid=grid,
        in_specs=[
            pl.BlockSpec((tb_eff, obs), lambda i: (i, 0)),
            resident(w1), resident(b1),
            resident(w2), resident(b2),
            resident(w3), resident(b3),
            resident(w4), resident(b4),
        ],
        out_specs=pl.BlockSpec((tb_eff, act_pad), lambda i: (i, 0)),
        compiler_params=pltpu.CompilerParams(
            dimension_semantics=("parallel",)),
        cost_estimate=pl.CostEstimate(
            flops=flops, transcendentals=transcendentals,
            bytes_accessed=bytes_accessed),
    )(x_p, w1, b1, w2, b2, w3, b3, w4, b4)

    if return_padded:
        # consumer indexes the padded (b_pad, act_pad) array itself (saves the
        # post-kernel slice copy)
        return out
    return out[:B, :action_space]


def init_params(key, observation_space, action_space):
    """Deterministic init mirroring nn.Linear shapes (stored transposed: [in, out])."""
    sizes = [(observation_space, 128), (128, 256), (256, 128), (128, action_space)]
    params = {}
    keys = jax.random.split(key, 2 * len(sizes))
    for idx, (fan_in, fan_out) in enumerate(sizes):
        bound = 1.0 / jnp.sqrt(fan_in)
        w = jax.random.uniform(keys[2 * idx], (fan_in, fan_out),
                               minval=-bound, maxval=bound, dtype=jnp.float32)
        b = jax.random.uniform(keys[2 * idx + 1], (1, fan_out),
                               minval=-bound, maxval=bound, dtype=jnp.float32)
        params[f"w{idx + 1}"] = w
        params[f"b{idx + 1}"] = b
    return params


def reference_forward(x, params):
    """Pure f32 reference (matches the PyTorch module semantics)."""
    h = jax.nn.relu(x @ params["w1"] + params["b1"])
    h = jax.nn.relu(h @ params["w2"] + params["b2"])
    h = jax.nn.relu(h @ params["w3"] + params["b3"])
    logits = h @ params["w4"] + params["b4"]
    return jax.nn.softmax(logits, axis=-1)


def reference_forward_bf16(x, params):
    """Reference with the same bf16-operand / f32-accumulate matmul policy as the kernel."""
    def mm(a, w):
        return jnp.dot(a.astype(jnp.bfloat16), w.astype(jnp.bfloat16),
                       preferred_element_type=jnp.float32)
    h = jax.nn.relu(mm(x, params["w1"]) + params["b1"]).astype(jnp.bfloat16)
    h = jax.nn.relu(mm(h, params["w2"]) + params["b2"]).astype(jnp.bfloat16)
    h = jax.nn.relu(mm(h, params["w3"]) + params["b3"]).astype(jnp.bfloat16)
    logits = mm(h, params["w4"]) + params["b4"]
    return jax.nn.softmax(logits, axis=-1)


if __name__ == "__main__":
    observation_space = 32
    action_space = 8
    batch = 8

    key = jax.random.PRNGKey(0)
    kx, kp = jax.random.split(key)
    x = jax.random.normal(kx, (batch, observation_space), dtype=jnp.float32)
    params = init_params(kp, observation_space, action_space)
    kparams = prepare_kernel_params(params)   # one-time weight prep (hoisted)

    # --- small-batch correctness check --------------------------------------
    out = jax.block_until_ready(policy_network_forward(x, kparams))
    assert out.shape == (batch, action_space)
    assert out.dtype == jnp.bfloat16
    out_f32 = out.astype(jnp.float32)

    ref_bf16 = reference_forward_bf16(x, params)
    ref_f32 = reference_forward(x, params)

    # bf16 output + approx reciprocal -> relaxed tolerances
    assert jnp.allclose(jnp.sum(out_f32, axis=-1), 1.0, atol=2e-2)
    assert jnp.allclose(out_f32, ref_bf16, atol=2e-2, rtol=5e-2)
    assert jnp.allclose(out_f32, ref_f32, atol=5e-2, rtol=5e-2)

    # --- larger, non-multiple batch: exercises padding + multi-step grid ----
    big_batch = 700
    xb = jax.random.normal(jax.random.PRNGKey(1), (big_batch, observation_space),
                           dtype=jnp.float32)
    out_big = jax.block_until_ready(policy_network_forward(xb, kparams))
    assert out_big.shape == (big_batch, action_space)
    assert jnp.allclose(jnp.sum(out_big.astype(jnp.float32), axis=-1), 1.0, atol=2e-2)
    assert jnp.allclose(out_big.astype(jnp.float32),
                        reference_forward_bf16(xb, params), atol=2e-2, rtol=5e-2)

    print("KERNEL_OK")
</pallas_src>

<mosaic_0001>
module attributes {stable_mosaic.version = 11 : i64} {
  func.func @policy_kernel(%arg0: i32, %arg1: memref<8x32xbf16, #tpu.memory_space<vmem>>, %arg2: memref<32x128xbf16, #tpu.memory_space<vmem>>, %arg3: memref<1x128xf32, #tpu.memory_space<vmem>>, %arg4: memref<128x256xbf16, #tpu.memory_space<vmem>>, %arg5: memref<1x256xf32, #tpu.memory_space<vmem>>, %arg6: memref<256x128xbf16, #tpu.memory_space<vmem>>, %arg7: memref<1x128xf32, #tpu.memory_space<vmem>>, %arg8: memref<128x128xbf16, #tpu.memory_space<vmem>>, %arg9: memref<1x128xf32, #tpu.memory_space<vmem>>, %arg10: memref<8x128xbf16, #tpu.memory_space<vmem>>) attributes {dimension_semantics = [#tpu.dimension_semantics<parallel>], iteration_bounds = array<i64: 1>, scalar_prefetch = 0 : i64, scratch_operands = 0 : i64, tpu.core_type = #tpu.core_type<tc>, window_params = [{transform_indices = @transform_0, window_bounds = array<i64: 8, 32>}, {pipeline_mode = #tpu.pipeline_mode<synchronous>, transform_indices = @transform_1, window_bounds = array<i64: 32, 128>}, {pipeline_mode = #tpu.pipeline_mode<synchronous>, transform_indices = @transform_2, window_bounds = array<i64: 1, 128>}, {pipeline_mode = #tpu.pipeline_mode<synchronous>, transform_indices = @transform_3, window_bounds = array<i64: 128, 256>}, {pipeline_mode = #tpu.pipeline_mode<synchronous>, transform_indices = @transform_4, window_bounds = array<i64: 1, 256>}, {pipeline_mode = #tpu.pipeline_mode<synchronous>, transform_indices = @transform_5, window_bounds = array<i64: 256, 128>}, {pipeline_mode = #tpu.pipeline_mode<synchronous>, transform_indices = @transform_6, window_bounds = array<i64: 1, 128>}, {pipeline_mode = #tpu.pipeline_mode<synchronous>, transform_indices = @transform_7, window_bounds = array<i64: 128, 128>}, {pipeline_mode = #tpu.pipeline_mode<synchronous>, transform_indices = @transform_8, window_bounds = array<i64: 1, 128>}, {transform_indices = @transform_9, window_bounds = array<i64: 8, 128>}]} {
    %c0 = arith.constant 0 : index
    %c0_0 = arith.constant 0 : index
    %0 = vector.load %arg1[%c0, %c0_0] : memref<8x32xbf16, #tpu.memory_space<vmem>>, vector<8x32xbf16>
    %c0_1 = arith.constant 0 : index
    %c0_2 = arith.constant 0 : index
    %1 = vector.load %arg2[%c0_1, %c0_2] : memref<32x128xbf16, #tpu.memory_space<vmem>>, vector<32x128xbf16>
    %cst = arith.constant dense<0.000000e+00> : vector<8x128xf32>
    %2 = tpu.matmul %0, %1, %cst {dimension_numbers = #tpu.dot_dimension_numbers<[1], [0], [0], [1], [0, 0, 1, 1], [], []>} : vector<8x32xbf16>, vector<32x128xbf16>, vector<8x128xf32> -> vector<8x128xf32>
    %c0_3 = arith.constant 0 : index
    %c0_4 = arith.constant 0 : index
    %3 = vector.load %arg3[%c0_3, %c0_4] : memref<1x128xf32, #tpu.memory_space<vmem>>, vector<1x128xf32>
    %4 = vector.broadcast %3 : vector<1x128xf32> to vector<8x128xf32>
    %5 = arith.addf %2, %4 : vector<8x128xf32>
    %cst_5 = arith.constant 0.000000e+00 : f32
    %6 = vector.broadcast %cst_5 : f32 to vector<8x128xf32>
    %7 = arith.maximumf %5, %6 : vector<8x128xf32>
    %8 = arith.truncf %7 : vector<8x128xf32> to vector<8x128xbf16>
    %c0_6 = arith.constant 0 : index
    %c0_7 = arith.constant 0 : index
    %9 = vector.load %arg4[%c0_6, %c0_7] : memref<128x256xbf16, #tpu.memory_space<vmem>>, vector<128x256xbf16>
    %cst_8 = arith.constant dense<0.000000e+00> : vector<8x256xf32>
    %10 = tpu.matmul %8, %9, %cst_8 {dimension_numbers = #tpu.dot_dimension_numbers<[1], [0], [0], [1], [0, 0, 1, 1], [], []>} : vector<8x128xbf16>, vector<128x256xbf16>, vector<8x256xf32> -> vector<8x256xf32>
    %c0_9 = arith.constant 0 : index
    %c0_10 = arith.constant 0 : index
    %11 = vector.load %arg5[%c0_9, %c0_10] : memref<1x256xf32, #tpu.memory_space<vmem>>, vector<1x256xf32>
    %12 = vector.broadcast %11 : vector<1x256xf32> to vector<8x256xf32>
    %13 = arith.addf %10, %12 : vector<8x256xf32>
    %cst_11 = arith.constant 0.000000e+00 : f32
    %14 = vector.broadcast %cst_11 : f32 to vector<8x256xf32>
    %15 = arith.maximumf %13, %14 : vector<8x256xf32>
    %16 = arith.truncf %15 : vector<8x256xf32> to vector<8x256xbf16>
    %c0_12 = arith.constant 0 : index
    %c0_13 = arith.constant 0 : index
    %17 = vector.load %arg6[%c0_12, %c0_13] : memref<256x128xbf16, #tpu.memory_space<vmem>>, vector<256x128xbf16>
    %cst_14 = arith.constant dense<0.000000e+00> : vector<8x128xf32>
    %18 = tpu.matmul %16, %17, %cst_14 {dimension_numbers = #tpu.dot_dimension_numbers<[1], [0], [0], [1], [0, 0, 1, 1], [], []>} : vector<8x256xbf16>, vector<256x128xbf16>, vector<8x128xf32> -> vector<8x128xf32>
    %c0_15 = arith.constant 0 : index
    %c0_16 = arith.constant 0 : index
    %19 = vector.load %arg7[%c0_15, %c0_16] : memref<1x128xf32, #tpu.memory_space<vmem>>, vector<1x128xf32>
    %20 = vector.broadcast %19 : vector<1x128xf32> to vector<8x128xf32>
    %21 = arith.addf %18, %20 : vector<8x128xf32>
    %cst_17 = arith.constant 0.000000e+00 : f32
    %22 = vector.broadcast %cst_17 : f32 to vector<8x128xf32>
    %23 = arith.maximumf %21, %22 : vector<8x128xf32>
    %24 = arith.truncf %23 : vector<8x128xf32> to vector<8x128xbf16>
    %c0_18 = arith.constant 0 : index
    %c0_19 = arith.constant 0 : index
    %25 = vector.load %arg8[%c0_18, %c0_19] : memref<128x128xbf16, #tpu.memory_space<vmem>>, vector<128x128xbf16>
    %cst_20 = arith.constant dense<0.000000e+00> : vector<8x128xf32>
    %26 = tpu.matmul %24, %25, %cst_20 {dimension_numbers = #tpu.dot_dimension_numbers<[1], [0], [0], [1], [0, 0, 1, 1], [], []>} : vector<8x128xbf16>, vector<128x128xbf16>, vector<8x128xf32> -> vector<8x128xf32>
    %c0_21 = arith.constant 0 : index
    %c0_22 = arith.constant 0 : index
    %27 = vector.load %arg9[%c0_21, %c0_22] : memref<1x128xf32, #tpu.memory_space<vmem>>, vector<1x128xf32>
    %28 = vector.broadcast %27 : vector<1x128xf32> to vector<8x128xf32>
    %29 = arith.addf %26, %28 : vector<8x128xf32>
    %cst_23 = arith.constant dense<0xFF800000> : vector<8xf32>
    %30 = vector.multi_reduction <maximumf>, %29, %cst_23 [1] : vector<8x128xf32> to vector<8xf32>
    %31 = vector.shape_cast %30 : vector<8xf32> to vector<8x1xf32>
    %32 = vector.broadcast %31 : vector<8x1xf32> to vector<8x128xf32>
    %33 = arith.subf %29, %32 : vector<8x128xf32>
    %34 = math.exp %33 : vector<8x128xf32>
    %cst_24 = arith.constant dense<0.000000e+00> : vector<8xf32>
    %35 = vector.multi_reduction <add>, %34, %cst_24 [1] : vector<8x128xf32> to vector<8xf32>
    %36 = vector.shape_cast %35 : vector<8xf32> to vector<8x1xf32>
    %37 = tpu.reciprocal %36 {approx = true} : vector<8x1xf32> -> vector<8x1xf32>
    %38 = vector.broadcast %37 : vector<8x1xf32> to vector<8x128xf32>
    %39 = arith.mulf %34, %38 : vector<8x128xf32>
    %40 = arith.truncf %39 : vector<8x128xf32> to vector<8x128xbf16>
    %c0_25 = arith.constant 0 : index
    %c0_26 = arith.constant 0 : index
    %41 = vector.load %arg10[%c0_25, %c0_26] : memref<8x128xbf16, #tpu.memory_space<vmem>>, vector<8x128xbf16>
    tpu.vector_store %arg10[%c0_25, %c0_26], %40 {strides = array<i32>} : memref<8x128xbf16, #tpu.memory_space<vmem>>, vector<8x128xbf16>,
    return
  }
  func.func @transform_0(%arg0: i32) -> (i32, i32) {
    %c0_i32 = arith.constant 0 : i32
    %c0_i32_0 = arith.constant 0 : i32
    return %arg0, %c0_i32 : i32, i32
  }
  func.func @transform_1(%arg0: i32) -> (i32, i32) {
    %c0_i32 = arith.constant 0 : i32
    %c0_i32_0 = arith.constant 0 : i32
    %c0_i32_1 = arith.constant 0 : i32
    return %c0_i32, %c0_i32_0 : i32, i32
  }
  func.func @transform_2(%arg0: i32) -> (i32, i32) {
    %c0_i32 = arith.constant 0 : i32
    %c0_i32_0 = arith.constant 0 : i32
    %c0_i32_1 = arith.constant 0 : i32
    return %c0_i32, %c0_i32_0 : i32, i32
  }
  func.func @transform_3(%arg0: i32) -> (i32, i32) {
    %c0_i32 = arith.constant 0 : i32
    %c0_i32_0 = arith.constant 0 : i32
    %c0_i32_1 = arith.constant 0 : i32
    return %c0_i32, %c0_i32_0 : i32, i32
  }
  func.func @transform_4(%arg0: i32) -> (i32, i32) {
    %c0_i32 = arith.constant 0 : i32
    %c0_i32_0 = arith.constant 0 : i32
    %c0_i32_1 = arith.constant 0 : i32
    return %c0_i32, %c0_i32_0 : i32, i32
  }
  func.func @transform_5(%arg0: i32) -> (i32, i32) {
    %c0_i32 = arith.constant 0 : i32
    %c0_i32_0 = arith.constant 0 : i32
    %c0_i32_1 = arith.constant 0 : i32
    return %c0_i32, %c0_i32_0 : i32, i32
  }
  func.func @transform_6(%arg0: i32) -> (i32, i32) {
    %c0_i32 = arith.constant 0 : i32
    %c0_i32_0 = arith.constant 0 : i32
    %c0_i32_1 = arith.constant 0 : i32
    return %c0_i32, %c0_i32_0 : i32, i32
  }
  func.func @transform_7(%arg0: i32) -> (i32, i32) {
    %c0_i32 = arith.constant 0 : i32
    %c0_i32_0 = arith.constant 0 : i32
    %c0_i32_1 = arith.constant 0 : i32
    return %c0_i32, %c0_i32_0 : i32, i32
  }
  func.func @transform_8(%arg0: i32) -> (i32, i32) {
    %c0_i32 = arith.constant 0 : i32
    %c0_i32_0 = arith.constant 0 : i32
    %c0_i32_1 = arith.constant 0 : i32
    return %c0_i32, %c0_i32_0 : i32, i32
  }
  func.func @transform_9(%arg0: i32) -> (i32, i32) {
    %c0_i32 = arith.constant 0 : i32
    %c0_i32_0 = arith.constant 0 : i32
    return %arg0, %c0_i32 : i32, i32
  }
}

</mosaic_0001>

<bundles_post_ra>
// kernel: tpu_custom_call.1
= control target key start
LH: loop header
LB: loop body
LE: loop exit
PB: predicated region body
PF: predicated region fallthrough
CT: control target
= control target key end

     0   :  { %14 = vsyncpa [#allocation3], 0  ;;  %s1058_s0 = inlined_call_operand.hbm [shape: bf16[8,32], index: 0, kind: input, shape index: {}]   ;;  %s1059_s1 = inlined_call_operand.hbm [shape: bf16[32,128], index: 1, kind: input, shape index: {}]   ;;  %s1060_s2 = inlined_call_operand.vmem [shape: f32[1,128], index: 2, kind: input, shape index: {}]   ;;  %s1061_s3 = inlined_call_operand.hbm [shape: bf16[128,256], index: 3, kind: input, shape index: {}]   ;;  %s1062_s4 = inlined_call_operand.vmem [shape: f32[1,256], index: 4, kind: input, shape index: {}]   ;;  %s1063_s5 = inlined_call_operand.hbm [shape: bf16[256,128], index: 5, kind: input, shape index: {}]   ;;  %s1064_s6 = inlined_call_operand.vmem [shape: f32[1,128], index: 6, kind: input, shape index: {}]   ;;  %s1065_s7 = inlined_call_operand.hbm [shape: bf16[128,128], index: 7, kind: input, shape index: {}]   ;;  %s1066_s8 = inlined_call_operand.vmem [shape: f32[1,128], index: 8, kind: input, shape index: {}]   ;;  %s1067_s9 = inlined_call_operand.hbm [shape: bf16[8,128], index: 9, kind: output, shape index: {}]  }
   0x1   :  { %15 = vsyncpa [#allocation6], 0 }
   0x2   :  { %16 = vsyncpa [#allocation9], 0 }
   0x3   :  { %17 = vsyncpa [#allocation4], 0  ;;  %s942_s30 = smov [#allocation5]  }
   0x4   :  { %s33_s10 = sshll.u32 %s942_s30, 4  ;;  %s34_s10 = int_to_ptr.vmem [resolvable:$true] %s33_s10 }
   0x5   :  { %s822_s11 = scalar_lea.vmem %s34_s10, 256  ;;  %p827_p1 = scmp.lt.s32.totalorder %s34_s10, %s34_s10 }
   0x6   :  { %p823_p0 = scmp.ne.s32.totalorder %s34_s10, %s822_s11  ;;  %p828_p2 = scmp.lt.s32.totalorder %s822_s11, %s822_s11 }
   0x8   :  { %p829_p3 = por %p828_p2, %p827_p1 }
   0xa   :  { %p830_p4 = pnand %p829_p3, %p823_p0 }
   0xc   :  { %833 = shalt.err (!%p830_p4)
}
   0xd   :  { %s943_s12 = smov 64   ;;  %s944_s13 = smov 4  }
   0xe   :  { %39 = dma.hbm_to_vmem [thread:$0]  %s1059_s1, 256, %s34_s10, [#allocation6], %s943_s12, %s943_s12, %s944_s13  }
   0xf   :  { %s945_s16 = smov [#allocation8]   ;;  %s946_s18 = smov [#allocation2]  }
  0x10   :  { %s61_s17 = sshll.u32 %s945_s16, 4  ;;  %s24_s19 = sshll.u32 %s946_s18, 4  ;;  %s62_s17 = int_to_ptr.vmem [resolvable:$true] %s61_s17  ;;  %s25_s19 = int_to_ptr.vmem [resolvable:$true] %s24_s19 }
  0x11   :  { %s842_s20 = scalar_lea.vmem %s62_s17, 2048  ;;  %p847_p6 = scmp.lt.s32.totalorder %s62_s17, %s62_s17 }
  0x12   :  { %p843_p5 = scmp.ne.s32.totalorder %s62_s17, %s842_s20  ;;  %p848_p7 = scmp.lt.s32.totalorder %s842_s20, %s842_s20 }
  0x14   :  { %p849_p8 = por %p848_p7, %p847_p6 }
  0x16   :  { %p850_p9 = pnand %p849_p8, %p843_p5 }
  0x18   :  { %853 = shalt.err (!%p850_p9)
}
  0x19   :  { %67 = dma.hbm_to_vmem [thread:$0]  %s1063_s5, 2048, %s62_s17, [#allocation9], %s943_s12, %s943_s12, %s944_s13  }
  0x1a   :  { %s862_s1 = scalar_lea.vmem %s25_s19, 64  ;;  %p867_p11 = scmp.lt.s32.totalorder %s25_s19, %s25_s19 }
  0x1b   :  { %p863_p10 = scmp.ne.s32.totalorder %s25_s19, %s862_s1  ;;  %p868_p12 = scmp.lt.s32.totalorder %s862_s1, %s862_s1 }
  0x1d   :  { %p869_p13 = por %p868_p12, %p867_p11 }
  0x1f   :  { %p870_p0 = pnand %p869_p13, %p863_p10 }
  0x21   :  { %873 = shalt.err (!%p870_p0)
}
  0x22   :  { %27 = dma.hbm_to_vmem [thread:$0]  %s1058_s0, 64, %s25_s19, [#allocation3]  }
  0x23   :  { %s947_s25 = smov [#allocation7]  }
  0x24   :  { %s47_s26 = sshll.u32 %s947_s25, 4  ;;  %s48_s26 = int_to_ptr.vmem [resolvable:$true] %s47_s26 }
  0x25   :  { %s882_s27 = scalar_lea.vmem %s48_s26, 2048  ;;  %p887_p2 = scmp.lt.s32.totalorder %s48_s26, %s48_s26 }
  0x26   :  { %p883_p1 = scmp.ne.s32.totalorder %s48_s26, %s882_s27  ;;  %p888_p3 = scmp.lt.s32.totalorder %s882_s27, %s882_s27 }
  0x28   :  { %p889_p4 = por %p888_p3, %p887_p2 }
  0x2a   :  { %p890_p5 = pnand %p889_p4, %p883_p1 }
  0x2c   :  { %893 = shalt.err (!%p890_p5)
}
  0x2d   :  { %s948_s5 = smov 128   ;;  %s949_s28 = smov 8  }
  0x2e   :  { %53 = dma.hbm_to_vmem [thread:$0]  %s1061_s3, 2048, %s48_s26, [#allocation6], %s948_s5, %s948_s5, %s949_s28  }
  0x2f   :  { %s950_s10 = smov [#allocation10]  }
  0x30   :  { %s75_s11 = sshll.u32 %s950_s10, 4  ;;  %s76_s11 = int_to_ptr.vmem [resolvable:$true] %s75_s11 }
  0x31   :  { %s902_s0 = scalar_lea.vmem %s76_s11, 1024  ;;  %p907_p7 = scmp.lt.s32.totalorder %s76_s11, %s76_s11 }
  0x32   :  { %p903_p6 = scmp.ne.s32.totalorder %s76_s11, %s902_s0  ;;  %p908_p8 = scmp.lt.s32.totalorder %s902_s0, %s902_s0 }
  0x34   :  { %p909_p9 = por %p908_p8, %p907_p7 }
  0x36   :  { %p910_p10 = pnand %p909_p9, %p903_p6 }
  0x38   :  { %913 = shalt.err (!%p910_p10)
}
  0x39   :  { %81 = dma.hbm_to_vmem [thread:$0]  %s1065_s7, 1024, %s76_s11, [#allocation9], %s943_s12, %s943_s12, %s944_s13  }
  0x3a   :  { %934 = dma.done.wait [#allocation3], 64  }
  0x3b   :  { %935 = vsyncadd [#allocation3], 4294967232 }
  0x3c   :  { %936 = dma.done.wait [#allocation6], 2304  }
  0x3d   :  { %937 = vsyncadd [#allocation6], 4294964992 }
  0x3e   :  { %938 = dma.done.wait [#allocation9], 3072  }
  0x3f   :  { %939 = vsyncadd [#allocation9], 4294964224  ;;  %v951_v0 = vmov 0.0   ;;  %vm952_vm0 = vmmov 0   ;;  %v760_v1 = vld [vmem:[#allocation5 + $0x8] sm:$0xff]   ;;  %v761_v2 = vld [vmem:[#allocation5] sm:$0xff]   ;;  %v188_v50 = vlaneseq }
  0x40   :  { %719 = vmatprep.subr.bf16.mxu0 %v951_v0  ;;  %723 = vmatprep.mubr.msk.bf16.mxu0 %vm952_vm0, %v951_v0  ;;  %v762_v3 = vld [vmem:[#allocation7 + $0x74] ss:$8 sps:$4 sm:$0xff]   ;;  %v764_v4 = vld [vmem:[#allocation7 + $0x70] ss:$8 sps:$4 sm:$0xff]   ;;  %v765_v5 = vld [vmem:[#allocation7 + $0x64] ss:$8 sps:$4 sm:$0xff]  }
  0x41   :  { %720 = vmatpush3.bf16.msra.mxu0 %v760_v1  ;;  %v100_v6 = vld [vmem:[#allocation2] sm:$0xf]  ;;  %278 = vmatprep.subr.bf16.mxu1 %v762_v3  ;;  %vm124_vm1 = vcmask 261120   ;;  %v767_v7 = vld [vmem:[#allocation7 + $0x60] ss:$8 sps:$4 sm:$0xff]   ;;  %v953_v20 = vmov 0  }
  0x42   :  { %721 = vmatprep.subr.bf16.mxu0 %v951_v0  ;;  %279 = vmatpush1.bf16.msra.mxu1 %v764_v4  ;;  %v768_v8 = vld [vmem:[#allocation7 + $0x54] ss:$8 sps:$4 sm:$0xff]   ;;  %v770_v9 = vld [vmem:[#allocation7 + $0x50] ss:$8 sps:$4 sm:$0xff]   ;;  %v771_v10 = vld [vmem:[#allocation7 + $0x44] ss:$8 sps:$4 sm:$0xff]  }
  0x43   :  { %280 = vmatprep.subr.bf16.mxu1 %v765_v5  ;;  %v773_v11 = vld [vmem:[#allocation7 + $0x40] ss:$8 sps:$4 sm:$0xff]   ;;  %v774_v12 = vld [vmem:[#allocation7 + $0x34] ss:$8 sps:$4 sm:$0xff]   ;;  %v776_v13 = vld [vmem:[#allocation7 + $0x30] ss:$8 sps:$4 sm:$0xff]   ;;  %310 = vmatprep.mubr.bf16.mxu1 %v953_v20 }
  0x44   :  { %v777_v14 = vld [vmem:[#allocation7 + $0x24] ss:$8 sps:$4 sm:$0xff]   ;;  %v779_v15 = vld [vmem:[#allocation7 + $0x20] ss:$8 sps:$4 sm:$0xff]   ;;  %v780_v16 = vld [vmem:[#allocation7 + $0x14] ss:$8 sps:$4 sm:$0xff]  }
  0x45   :  { %722 = vmatpush3.bf16.msra.mxu0 %v761_v2  ;;  %v782_v17 = vld [vmem:[#allocation7 + $0x10] ss:$8 sps:$4 sm:$0xff]   ;;  %v783_v18 = vld [vmem:[#allocation7 + $0x4] ss:$8 sps:$4 sm:$0xff]   ;;  %v785_v19 = vld [vmem:[#allocation7] ss:$8 sps:$4 sm:$0xff]  }
  0x46   :  { %281 = vmatpush1.bf16.msra.mxu1 %v767_v7  ;;  %v786_v21 = vld [vmem:[#allocation8 + $0x78] sm:$0xff]   ;;  %v788_v23 = vld [vmem:[#allocation8 + $0x70] sm:$0xff]   ;;  %v790_v25 = vld [vmem:[#allocation8 + $0x68] sm:$0xff]   ;;  %v189_v51 = vshrl.u32 %v188_v50, 7 }
  0x47   :  { %282 = vmatprep.subr.bf16.mxu1 %v768_v8  ;;  %v787_v22 = vld [vmem:[#allocation8 + $0x38] sm:$0xff]   ;;  %688 = vmatprep.subr.bf16.mxu0 %v786_v21  ;;  %v789_v24 = vld [vmem:[#allocation8 + $0x30] sm:$0xff]   ;;  %v791_v26 = vld [vmem:[#allocation8 + $0x28] sm:$0xff]  }
  0x48   :  { %724 = vmatmul.mubr.msk.bf16.vlgmr.msra.gmra.mxu0 %vm124_vm1, %v100_v6  ;;  %v792_v27 = vld [vmem:[#allocation8 + $0x60] sm:$0xff]   ;;  %v794_v29 = vld [vmem:[#allocation8 + $0x58] sm:$0xff]   ;;  %v796_v31 = vld [vmem:[#allocation8 + $0x50] sm:$0xff]   ;;  %v190_v52 = vsub.s32 0, %v189_v51  ;;  %v194_v54 = vsub.s32 1, %v189_v51 }
  0x49   :  { %689 = vmatpush3.bf16.msra.mxu0 %v787_v22  ;;  %v793_v28 = vld [vmem:[#allocation8 + $0x20] sm:$0xff]   ;;  %v795_v30 = vld [vmem:[#allocation8 + $0x18] sm:$0xff]   ;;  %v797_v32 = vld [vmem:[#allocation8 + $0x10] sm:$0xff]  }
  0x4a   :  { %283 = vmatpush1.bf16.msra.mxu1 %v770_v9  ;;  %690 = vmatprep.subr.bf16.mxu0 %v788_v23  ;;  %v639_v33 = vld [vmem:[%s1060_s2] ss:$0 sm:$0xff]  ;;  %v800_v43 = vld [vmem:[#allocation8 + $0x40] sm:$0xff]   ;;  %v802_v45 = vld [vmem:[#allocation10 + $0x38] sm:$0xff]  }
  0x4b   :  { %284 = vmatprep.subr.bf16.mxu1 %v771_v10  ;;  %v798_v41 = vld [vmem:[#allocation8 + $0x48] sm:$0xff]   ;;  %v801_v44 = vld [vmem:[#allocation8] sm:$0xff]   ;;  %v803_v46 = vld [vmem:[#allocation10 + $0x30] sm:$0xff]  }
  0x4c   :  { %v799_v42 = vld [vmem:[#allocation8 + $0x8] sm:$0xff]   ;;  %v805_v48 = vld [vmem:[#allocation10 + $0x20] sm:$0xff]   ;;  %v806_v49 = vld [vmem:[#allocation10 + $0x18] sm:$0xff]  }
  0x4d   :  { %691 = vmatpush3.bf16.msra.mxu0 %v789_v24  ;;  %v804_v47 = vld [vmem:[#allocation10 + $0x28] sm:$0xff]   ;;  %v807_v4 = vld [vmem:[#allocation10 + $0x10] sm:$0xff]   ;;  %v809_v6 = vld [vmem:[#allocation10] sm:$0xff]  }
  0x4e   :  { %285 = vmatpush1.bf16.msra.mxu1 %v773_v11  ;;  %692 = vmatprep.subr.bf16.mxu0 %v790_v25  ;;  %v186_v53 = vld [vmem:[%s1062_s4] sm:$0x3] }
  0x4f   :  { %286 = vmatprep.subr.bf16.mxu1 %v774_v12  ;;  %v191_v55 = vrot.slane %v186_v53, %v190_v52  ;;  %v195_v56 = vrot.slane %v186_v53, %v194_v54  ;;  %v808_v5 = vld [vmem:[#allocation10 + $0x8] sm:$0xff]  }
  0x50   :  { %v659_v8 = vld [vmem:[%s1064_s6] ss:$0 sm:$0xff]  ;;  %s954_s6 = smov [#allocation11]  }
  0x51   :  { %693 = vmatpush3.bf16.msra.mxu0 %v791_v26  ;;  %s628_s18 = sshll.u32 %s954_s6, 4  ;;  %s629_s18 = int_to_ptr.vmem [resolvable:$true] %s628_s18 }
  0x52   :  { %287 = vmatpush1.bf16.msra.mxu1 %v776_v13  ;;  %694 = vmatprep.subr.bf16.mxu0 %v792_v27  ;;  %p919_p12 = scmp.lt.s32.totalorder %s629_s18, %s629_s18 }
  0x53   :  { %288 = vmatprep.subr.bf16.mxu1 %v777_v14 }
  0x55   :  { %695 = vmatpush3.bf16.msra.mxu0 %v793_v28 }
  0x56   :  { %289 = vmatpush1.bf16.msra.mxu1 %v779_v15  ;;  %696 = vmatprep.subr.bf16.mxu0 %v794_v29 }
  0x57   :  { %290 = vmatprep.subr.bf16.mxu1 %v780_v16  ;;  %v676_v16 = vld [vmem:[%s1066_s8] ss:$0 sm:$0xff]  ;;  %s914_s8 = scalar_lea.vmem %s629_s18, 64 }
  0x58   :  { %p915_p11 = scmp.ne.s32.totalorder %s629_s18, %s914_s8  ;;  %p920_p13 = scmp.lt.s32.totalorder %s914_s8, %s914_s8 }
  0x59   :  { %697 = vmatpush3.bf16.msra.mxu0 %v795_v30 }
  0x5a   :  { %291 = vmatpush1.bf16.msra.mxu1 %v782_v17  ;;  %698 = vmatprep.subr.bf16.mxu0 %v796_v31  ;;  %p921_p0 = por %p920_p13, %p919_p12 }
  0x5b   :  { %292 = vmatprep.subr.bf16.mxu1 %v783_v18 }
  0x5c   :  { %p922_p1 = pnand %p921_p0, %p915_p11 }
  0x5d   :  { %699 = vmatpush3.bf16.msra.mxu0 %v797_v32 }
  0x5e   :  { %293 = vmatpush1.bf16.msra.mxu1 %v785_v19  ;;  %700 = vmatprep.subr.bf16.mxu0 %v798_v41 }
  0x5f   :  { %727 = vmatprep.subr.bf16.mxu1 %v951_v0 }
  0x61   :  { %701 = vmatpush3.bf16.msra.mxu0 %v799_v42 }
  0x62   :  { %702 = vmatprep.subr.bf16.mxu0 %v800_v43 }
  0x65   :  { %703 = vmatpush3.bf16.msra.mxu0 %v801_v44 }
 0x108   :  { %v162_v34 = vpop.f32.mrf.mxu0 }
 0x109   :  { %v163_v35 = vadd.f32 %v639_v33, %v162_v34 }
 0x10a   :  { %v725_v36 = vpop.f32.mrf.mxu0 }
 0x10b   :  { %v168_v37 = vmax.f32 %v163_v35, 0.0 }
 0x10c   :  { %v165_v38 = vpop.f32.mrf.mxu0 }
 0x10d   :  { %v169_v39 = vpack.c.bf16 %v168_v37, %v168_v37 }
 0x10e   :  { %v726_v40 = vpop.f32.mrf.mxu0 }
 0x10f   :  { %311 = vmatmul.mubr.bf16.vlgmr.msra.gmra.mxu1 %v169_v39 }
 0x110   :  { %743 = vmatprep.mubr.msk.bf16.mxu1 %vm952_vm0, %v951_v0  ;;  %728 = vmatpush3.bf16.msra.mxu1 %v802_v45 }
 0x111   :  { %729 = vmatprep.subr.bf16.mxu1 %v951_v0 }
 0x114   :  { %730 = vmatpush3.bf16.msra.mxu1 %v803_v46 }
 0x115   :  { %731 = vmatprep.subr.bf16.mxu1 %v951_v0 }
 0x118   :  { %732 = vmatpush3.bf16.msra.mxu1 %v804_v47 }
 0x119   :  { %733 = vmatprep.subr.bf16.mxu1 %v951_v0 }
 0x11c   :  { %734 = vmatpush3.bf16.msra.mxu1 %v805_v48 }
 0x11d   :  { %735 = vmatprep.subr.bf16.mxu1 %v951_v0 }
 0x120   :  { %736 = vmatpush3.bf16.msra.mxu1 %v806_v49 }
 0x121   :  { %737 = vmatprep.subr.bf16.mxu1 %v951_v0 }
 0x124   :  { %738 = vmatpush3.bf16.msra.mxu1 %v807_v4 }
 0x125   :  { %739 = vmatprep.subr.bf16.mxu1 %v951_v0 }
 0x128   :  { %740 = vmatpush3.bf16.msra.mxu1 %v808_v5 }
 0x129   :  { %741 = vmatprep.subr.bf16.mxu1 %v951_v0 }
 0x12c   :  { %742 = vmatpush3.bf16.msra.mxu1 %v809_v6 }
 0x1cf   :  { %v312_v57 = vpop.f32.mrf.mxu1 }
 0x1d0   :  { %v313_v58 = vadd.f32 %v312_v57, %v191_v55 }
 0x1d1   :  { %v314_v59 = vpop.f32.mrf.mxu1 }
 0x1d2   :  { %v315_v60 = vadd.f32 %v314_v59, %v195_v56  ;;  %v319_v61 = vmax.f32 %v313_v58, 0.0 }
 0x1d3   :  { %v316_v62 = vpop.f32.mrf.mxu1 }
 0x1d4   :  { %v320_v63 = vmax.f32 %v315_v60, 0.0  ;;  %v321_v3 = vpack.c.bf16 %v319_v61, %v319_v61 }
 0x1d5   :  { %v317_v1 = vpop.f32.mrf.mxu1 }
 0x1d6   :  { %v322_v2 = vpack.c.bf16 %v320_v63, %v320_v63 }
 0x1d8   :  { %490 = vmatprep.mubr.bf16.mxu0 %v322_v2 }
 0x1d9   :  { %491 = vmatmul.mubr.bf16.vlgmr.msra.gmra.mxu0 %v321_v3 }
 0x299   :  { %v704_v7 = vpop.f32.mrf.mxu0 }
 0x29b   :  { %v705_v9 = vpop.f32.mrf.mxu0 }
 0x29c   :  { %v706_v10 = vadd.f32 %v705_v9, %v704_v7 }
 0x29d   :  { %v707_v11 = vpop.f32.mrf.mxu0 }
 0x29e   :  { %v493_v12 = vadd.f32 %v706_v10, %v659_v8 }
 0x29f   :  { %v708_v13 = vpop.f32.mrf.mxu0 }
 0x2a0   :  { %v498_v14 = vmax.f32 %v493_v12, 0.0 }
 0x2a2   :  { %v499_v15 = vpack.c.bf16 %v498_v14, %v498_v14 }
 0x2a4   :  { %744 = vmatmul.mubr.bf16.vlgmr.msra.gmra.mxu1 %v499_v15 }
 0x364   :  { %v605_v0 = vpop.f32.mrf.mxu1 }
 0x365   :  { %v606_v17 = vadd.f32 %v676_v16, %v605_v0 }
 0x366   :  { %v745_v18 = vpop.f32.mrf.mxu1 }
 0x367   :  { %611 = vmax.xlane.f32.xlu0 %v606_v17 }
 0x368   :  { %v608_v19 = vpop.f32.mrf.mxu1 }
 0x36a   :  { %v746_v20 = vpop.f32.mrf.mxu1 }
 0x3f0   :  { %v612_v21 = vpop.xlane.xlu0 %611 }
 0x3f1   :  { %v613_v22 = vsub.f32 %v606_v17, %v612_v21 }
 0x3f3   :  { %v614_v23 = vmul.f32 1.442695, %v613_v22 }
 0x3f5   :  { %810 = vpow2.f32 %v614_v23 }
 0x402   :  { %v811_v24 = vpop.eup %810 }
 0x403   :  { %616 = vadd.xlane.f32.xlu0 %v811_v24 }
 0x48c   :  { %v617_v25 = vpop.xlane.xlu0 %616 }
 0x48d   :  { %812 = vrcp.f32 %v617_v25 }
 0x49a   :  { %v813_v26 = vpop.eup %812 }
 0x49b   :  { %v619_v27 = vmul.f32 %v813_v26, %v811_v24 }
 0x49d   :  { %v620_v28 = vpack.c.bf16 %v619_v27, %v619_v27 }
 0x49f   :  { %621 = vst [vmem:[#allocation11] sm:$0xf] %v620_v28 }
 0x4a0   :  { %925 = shalt.err (!%p922_p1)
}
 0x4a1   :  { %631 = dma.vmem_to_hbm [thread:$0]  %s629_s18, 64, %s1067_s9, [#allocation4]  }
 0x4a2   :  { %940 = dma.done.wait [#allocation4], 64  }
 0x4a3   :  { %941 = vsyncadd [#allocation4], 4294967232 }
 0x4a4   :  { %635 = vsyncpa [#allocation3], 1 }
 0x4a5   :  { %636 = vsyncpa [#allocation6], 1 }
 0x4a6   :  { %637 = vsyncpa [#allocation9], 1 }
 0x4a7   :  { %638 = vsyncpa [#allocation4], 1 }

</bundles_post_ra>
